<compile_context>
chip_gen: v7x
topology: tpu7x:2x2x1
jax: 0.10.0
libtpu: 0.0.40
codegen_flags: <defaults>
</compile_context>

<pallas_src>
import jax
import jax.numpy as jnp
from jax.experimental import pallas as pl
from jax.experimental.pallas import tpu as pltpu


def value_kernel(x_ref, w1_ref, b1_ref, w2_ref, b2_ref, w3_ref, b3_ref, out_ref):
    x = x_ref[...]                                        # (bt, in), matmul dtype
    # Layer 1: Linear + tanh (MXU matmul, f32 accumulate; bias + tanh in f32).
    h = jnp.dot(x, w1_ref[...], preferred_element_type=jnp.float32) + b1_ref[...]
    h = jnp.tanh(h)                                       # (bt, h1) f32
    # Layer 2: Linear + tanh.
    h = jnp.dot(h.astype(w2_ref.dtype), w2_ref[...],
                preferred_element_type=jnp.float32) + b2_ref[...]
    h = jnp.tanh(h)                                       # (bt, h2) f32
    # Value head: contract hidden dim, emit a lane-dense (1, bt) row.
    v = jnp.dot(w3_ref[...], h.T, preferred_element_type=jnp.float32) + b3_ref[...]
    out_ref[...] = v.reshape(out_ref.shape).astype(out_ref.dtype)


def _choose_batch_tile(batch):
    """Multiple-of-8 divisor of `batch`, <= 2048 rows, preferring a grid of >= 2 steps."""
    divisors = [d for d in range(8, batch + 1, 8) if batch % d == 0]
    if not divisors:
        return batch                      # tiny / ragged batch: single full-array block
    cap = min(2048, max(8, batch // 2))   # >= 2 grid steps whenever batch >= 16
    fitting = [d for d in divisors if d <= cap]
    return max(fitting) if fitting else min(divisors)


def value_forward(x, params, *, batch_tile=None, matmul_dtype=jnp.bfloat16):
    """x: (B, input_dim). params: dict from init_value_params. Returns (B, 1) f32."""
    B, input_dim = x.shape
    w1 = params["w1"].astype(matmul_dtype)    # (in,  h1)
    w2 = params["w2"].astype(matmul_dtype)    # (h1,  h2)
    b1, b2 = params["b1"], params["b2"]       # (1, h1), (1, h2)   f32
    w3, b3 = params["w3"], params["b3"]       # (1, h2), (1, 1)    f32
    h1, h2 = w1.shape[1], w2.shape[1]

    if batch_tile is None:
        batch_tile = _choose_batch_tile(B)
    assert B % batch_tile == 0, "batch_tile must divide the batch"
    assert batch_tile % 8 == 0 or batch_tile == B, "batch_tile must be a multiple of 8"
    num_tiles = B // batch_tile

    x_in = x.astype(matmul_dtype)             # bf16 in HBM halves the dominant read

    full = lambda a: pl.BlockSpec(a.shape, lambda i: (0, 0))
    itemsize = jnp.dtype(matmul_dtype).itemsize
    cost = pl.CostEstimate(
        flops=2 * B * (input_dim * h1 + h1 * h2 + h2),
        transcendentals=B * (h1 + h2),
        bytes_accessed=(B * input_dim * itemsize
                        + (input_dim * h1 + h1 * h2) * itemsize
                        + (h1 + h2 + h2 + 1) * 4
                        + B * 4),
    )

    out = pl.pallas_call(
        value_kernel,
        out_shape=jax.ShapeDtypeStruct((num_tiles, 1, batch_tile), jnp.float32),
        grid_spec=pltpu.PrefetchScalarGridSpec(
            num_scalar_prefetch=0,
            grid=(num_tiles,),
            in_specs=[
                pl.BlockSpec((batch_tile, input_dim), lambda i: (i, 0)),
                full(w1), full(b1),
                full(w2), full(b2),
                full(w3), full(b3),
            ],
            out_specs=pl.BlockSpec((1, 1, batch_tile), lambda i: (i, 0, 0)),
        ),
        compiler_params=pltpu.CompilerParams(
            dimension_semantics=("parallel",),
            vmem_limit_bytes=32 * 1024 * 1024,
        ),
        cost_estimate=cost,
    )(x_in, w1, b1, w2, b2, w3, b3)

    return out.reshape(B, 1)


def init_value_params(key, input_dim, hidden_dims=(128, 128)):
    """Mimics nn.Linear default init (uniform(+-1/sqrt(fan_in))); value head W*=0.1, b=0."""
    dims = (input_dim,) + tuple(hidden_dims)
    params = {}
    keys = jax.random.split(key, 2 * len(hidden_dims) + 1)
    ki = 0
    for li, (din, dout) in enumerate(zip(dims[:-1], dims[1:]), start=1):
        bound = 1.0 / float(jnp.sqrt(din))
        w = jax.random.uniform(keys[ki], (dout, din), jnp.float32, -bound, bound); ki += 1
        b = jax.random.uniform(keys[ki], (dout,), jnp.float32, -bound, bound); ki += 1
        params[f"w{li}"] = w.T                      # stored as (in, out) so kernel does x @ W
        params[f"b{li}"] = b.reshape(1, dout)
    h_last = dims[-1]
    bound = 1.0 / float(jnp.sqrt(h_last))
    w3 = jax.random.uniform(keys[ki], (1, h_last), jnp.float32, -bound, bound) * 0.1
    params["w3"] = w3                               # keep as a (1, h_last) row
    params["b3"] = jnp.zeros((1, 1), jnp.float32)
    return params


def value_reference(x, params, matmul_dtype=jnp.bfloat16):
    """Pure-JAX reference with the same matmul-input quantization as the kernel."""
    f32 = jnp.float32
    cast = lambda a: a.astype(matmul_dtype).astype(f32)
    mm = lambda a, b: jax.lax.dot(a, b, precision=jax.lax.Precision.HIGHEST,
                                  preferred_element_type=f32)
    h = jnp.tanh(mm(cast(x), cast(params["w1"])) + params["b1"])
    h = jnp.tanh(mm(cast(h), cast(params["w2"])) + params["b2"])
    return mm(h, params["w3"].T) + params["b3"]


if __name__ == "__main__":
    key = jax.random.PRNGKey(0)
    kx, kp = jax.random.split(key)

    B, INPUT_DIM = 256, 32          # small demo shapes; grid = 2 steps of 128 rows
    HIDDEN = (128, 128)

    x = jax.random.normal(kx, (B, INPUT_DIM), jnp.float32)
    params = init_value_params(kp, INPUT_DIM, HIDDEN)

    # Default path: bf16 MXU inputs, f32 accumulate / epilogue.
    out = jax.block_until_ready(value_forward(x, params))
    assert out.shape == (B, 1)
    ref = value_reference(x, params, jnp.bfloat16)
    assert jnp.allclose(out, ref, atol=5e-3, rtol=5e-3), "bf16 path mismatch vs reference"

    # Exact-f32 path against a pure-f32 reference.
    out_f32 = jax.block_until_ready(value_forward(x, params, matmul_dtype=jnp.float32))
    ref_f32 = value_reference(x, params, jnp.float32)
    assert jnp.allclose(out_f32, ref_f32, atol=1e-3, rtol=1e-3), "f32 path mismatch vs reference"

    print("KERNEL_OK")
</pallas_src>

<mosaic_0001>
module attributes {stable_mosaic.version = 11 : i64} {
  func.func @value_kernel(%arg0: i32, %arg1: memref<128x32xbf16, #tpu.memory_space<vmem>>, %arg2: memref<32x128xbf16, #tpu.memory_space<vmem>>, %arg3: memref<1x128xf32, #tpu.memory_space<vmem>>, %arg4: memref<128x128xbf16, #tpu.memory_space<vmem>>, %arg5: memref<1x128xf32, #tpu.memory_space<vmem>>, %arg6: memref<1x128xf32, #tpu.memory_space<vmem>>, %arg7: memref<1x1xf32, #tpu.memory_space<vmem>>, %arg8: memref<1x1x128xf32, #tpu.memory_space<vmem>>) attributes {dimension_semantics = [#tpu.dimension_semantics<parallel>], iteration_bounds = array<i64: 2>, scalar_prefetch = 0 : i64, scratch_operands = 0 : i64, tpu.core_type = #tpu.core_type<tc>, window_params = [{transform_indices = @transform_0, window_bounds = array<i64: 128, 32>}, {pipeline_mode = #tpu.pipeline_mode<synchronous>, transform_indices = @transform_1, window_bounds = array<i64: 32, 128>}, {pipeline_mode = #tpu.pipeline_mode<synchronous>, transform_indices = @transform_2, window_bounds = array<i64: 1, 128>}, {pipeline_mode = #tpu.pipeline_mode<synchronous>, transform_indices = @transform_3, window_bounds = array<i64: 128, 128>}, {pipeline_mode = #tpu.pipeline_mode<synchronous>, transform_indices = @transform_4, window_bounds = array<i64: 1, 128>}, {pipeline_mode = #tpu.pipeline_mode<synchronous>, transform_indices = @transform_5, window_bounds = array<i64: 1, 128>}, {pipeline_mode = #tpu.pipeline_mode<synchronous>, transform_indices = @transform_6, window_bounds = array<i64: 1, 1>}, {transform_indices = @transform_7, window_bounds = array<i64: 1, 1, 128>}]} {
    %c0 = arith.constant 0 : index
    %c0_0 = arith.constant 0 : index
    %0 = vector.load %arg1[%c0, %c0_0] : memref<128x32xbf16, #tpu.memory_space<vmem>>, vector<128x32xbf16>
    %c0_1 = arith.constant 0 : index
    %c0_2 = arith.constant 0 : index
    %1 = vector.load %arg2[%c0_1, %c0_2] : memref<32x128xbf16, #tpu.memory_space<vmem>>, vector<32x128xbf16>
    %cst = arith.constant dense<0.000000e+00> : vector<128x128xf32>
    %2 = tpu.matmul %0, %1, %cst {dimension_numbers = #tpu.dot_dimension_numbers<[1], [0], [0], [1], [0, 0, 1, 1], [], []>} : vector<128x32xbf16>, vector<32x128xbf16>, vector<128x128xf32> -> vector<128x128xf32>
    %c0_3 = arith.constant 0 : index
    %c0_4 = arith.constant 0 : index
    %3 = vector.load %arg3[%c0_3, %c0_4] : memref<1x128xf32, #tpu.memory_space<vmem>>, vector<1x128xf32>
    %4 = vector.broadcast %3 : vector<1x128xf32> to vector<128x128xf32>
    %5 = arith.addf %2, %4 : vector<128x128xf32>
    %6 = math.tanh %5 : vector<128x128xf32>
    %7 = arith.truncf %6 : vector<128x128xf32> to vector<128x128xbf16>
    %c0_5 = arith.constant 0 : index
    %c0_6 = arith.constant 0 : index
    %8 = vector.load %arg4[%c0_5, %c0_6] : memref<128x128xbf16, #tpu.memory_space<vmem>>, vector<128x128xbf16>
    %cst_7 = arith.constant dense<0.000000e+00> : vector<128x128xf32>
    %9 = tpu.matmul %7, %8, %cst_7 {dimension_numbers = #tpu.dot_dimension_numbers<[1], [0], [0], [1], [0, 0, 1, 1], [], []>} : vector<128x128xbf16>, vector<128x128xbf16>, vector<128x128xf32> -> vector<128x128xf32>
    %c0_8 = arith.constant 0 : index
    %c0_9 = arith.constant 0 : index
    %10 = vector.load %arg5[%c0_8, %c0_9] : memref<1x128xf32, #tpu.memory_space<vmem>>, vector<1x128xf32>
    %11 = vector.broadcast %10 : vector<1x128xf32> to vector<128x128xf32>
    %12 = arith.addf %9, %11 : vector<128x128xf32>
    %13 = math.tanh %12 : vector<128x128xf32>
    %c0_10 = arith.constant 0 : index
    %c0_11 = arith.constant 0 : index
    %14 = vector.load %arg6[%c0_10, %c0_11] : memref<1x128xf32, #tpu.memory_space<vmem>>, vector<1x128xf32>
    %15 = tpu.transpose %13, [1, 0] : vector<128x128xf32> -> vector<128x128xf32>
    %cst_12 = arith.constant dense<0.000000e+00> : vector<1x128xf32>
    %16 = tpu.matmul %14, %15, %cst_12 {dimension_numbers = #tpu.dot_dimension_numbers<[1], [0], [0], [1], [0, 0, 1, 1], [], []>} : vector<1x128xf32>, vector<128x128xf32>, vector<1x128xf32> -> vector<1x128xf32>
    %c0_13 = arith.constant 0 : index
    %c0_14 = arith.constant 0 : index
    %17 = vector.load %arg7[%c0_13, %c0_14] : memref<1x1xf32, #tpu.memory_space<vmem>>, vector<1x1xf32>
    %18 = vector.broadcast %17 : vector<1x1xf32> to vector<1x128xf32>
    %19 = arith.addf %16, %18 : vector<1x128xf32>
    %20 = vector.shape_cast %19 : vector<1x128xf32> to vector<1x1x128xf32>
    %c0_15 = arith.constant 0 : index
    %c0_16 = arith.constant 0 : index
    %c0_17 = arith.constant 0 : index
    %21 = vector.load %arg8[%c0_15, %c0_16, %c0_17] : memref<1x1x128xf32, #tpu.memory_space<vmem>>, vector<1x1x128xf32>
    tpu.vector_store %arg8[%c0_15, %c0_16, %c0_17], %20 {strides = array<i32>} : memref<1x1x128xf32, #tpu.memory_space<vmem>>, vector<1x1x128xf32>,
    return
  }
  func.func @transform_0(%arg0: i32) -> (i32, i32) {
    %c0_i32 = arith.constant 0 : i32
    %c0_i32_0 = arith.constant 0 : i32
    return %arg0, %c0_i32 : i32, i32
  }
  func.func @transform_1(%arg0: i32) -> (i32, i32) {
    %c0_i32 = arith.constant 0 : i32
    %c0_i32_0 = arith.constant 0 : i32
    %c0_i32_1 = arith.constant 0 : i32
    return %c0_i32, %c0_i32_0 : i32, i32
  }
  func.func @transform_2(%arg0: i32) -> (i32, i32) {
    %c0_i32 = arith.constant 0 : i32
    %c0_i32_0 = arith.constant 0 : i32
    %c0_i32_1 = arith.constant 0 : i32
    return %c0_i32, %c0_i32_0 : i32, i32
  }
  func.func @transform_3(%arg0: i32) -> (i32, i32) {
    %c0_i32 = arith.constant 0 : i32
    %c0_i32_0 = arith.constant 0 : i32
    %c0_i32_1 = arith.constant 0 : i32
    return %c0_i32, %c0_i32_0 : i32, i32
  }
  func.func @transform_4(%arg0: i32) -> (i32, i32) {
    %c0_i32 = arith.constant 0 : i32
    %c0_i32_0 = arith.constant 0 : i32
    %c0_i32_1 = arith.constant 0 : i32
    return %c0_i32, %c0_i32_0 : i32, i32
  }
  func.func @transform_5(%arg0: i32) -> (i32, i32) {
    %c0_i32 = arith.constant 0 : i32
    %c0_i32_0 = arith.constant 0 : i32
    %c0_i32_1 = arith.constant 0 : i32
    return %c0_i32, %c0_i32_0 : i32, i32
  }
  func.func @transform_6(%arg0: i32) -> (i32, i32) {
    %c0_i32 = arith.constant 0 : i32
    %c0_i32_0 = arith.constant 0 : i32
    %c0_i32_1 = arith.constant 0 : i32
    return %c0_i32, %c0_i32_0 : i32, i32
  }
  func.func @transform_7(%arg0: i32) -> (i32, i32, i32) {
    %c0_i32 = arith.constant 0 : i32
    %c0_i32_0 = arith.constant 0 : i32
    %c0_i32_1 = arith.constant 0 : i32
    return %arg0, %c0_i32, %c0_i32_0 : i32, i32, i32
  }
}

</mosaic_0001>

<bundles_post_ra>
// kernel: tpu_custom_call.1
= control target key start
LH: loop header
LB: loop body
LE: loop exit
PB: predicated region body
PF: predicated region fallthrough
CT: control target
= control target key end

     0   :  { %s1423_s0 = inlined_call_operand.vmem [shape: bf16[256,32], index: 0, kind: input, shape index: {}]   ;;  %s1424_s1 = inlined_call_operand.vmem [shape: bf16[32,128], index: 1, kind: input, shape index: {}]   ;;  %s1425_s2 = inlined_call_operand.vmem [shape: f32[1,128], index: 2, kind: input, shape index: {}]   ;;  %s1426_s3 = inlined_call_operand.vmem [shape: bf16[128,128], index: 3, kind: input, shape index: {}]   ;;  %s1427_s4 = inlined_call_operand.vmem [shape: f32[1,128], index: 4, kind: input, shape index: {}]   ;;  %s1428_s5 = inlined_call_operand.vmem [shape: f32[1,128], index: 5, kind: input, shape index: {}]   ;;  %s1429_s6 = inlined_call_operand.<no memory space> [shape: f32[1,1], index: 6, kind: input, shape index: {}]   ;;  %s1430_s7 = inlined_call_operand.hbm [shape: f32[2,1,128], index: 7, kind: output, shape index: {}]  }
   0x1   :  { %v12_v0 = vstv %s1429_s6 }
   0x2   :  { %13 = vst [vmem:[#allocation2] sm:$0x1] %v12_v0 }
   0x3   :  { %14 = vsyncpa [#allocation4], 0 }
   0x4   :  { %16 = vsyncpa [#allocation4 + $0x1], 0  ;;  %s1269_s26 = smov 0   ;;  %s1271_s27 = smov 0  }
   0x5   :  { %s1273_s28 = smov 0   ;;  %s1275_s29 = smov 0  }
   0x6 LB: > { %s839_s6 = sadd.s32 4294967295, %s1219_s29   ;;  %s840_s30 = sadd.s32 4294967294, %s1219_s29   ;;  %s1219_s29 = sphi %s1275_s29, %s1436_s29   ;;  %s1215_s28 = sphi %s1273_s28, %s1435_s28   ;;  %s1211_s27 = sphi %s1271_s27, %s1434_s27   ;;  %s1207_s26 = sphi %s1269_s26, %s1433_s26  }
   0x7   : > { %s1292_s8 = sadd.s32 1, %s1219_s29   ;;  %s181_s9 = sadd.s32 1, %s1215_s28 }
   0x8   : > { %s178_s10 = ssub.s32 %s1219_s29, %s1292_s8  ;;  %p191_p0 = scmp.ne.s32.totalorder %s1215_s28, %s1211_s27 }
   0x9   : > { %p179_p1 = scmp.eq.s32.totalorder %s178_s10, 0  ;;  %p192_p2 = scmp.eq.s32.totalorder %s839_s6, 1 }
   0xa   : > { %p197_p3 = scmp.ne.s32.totalorder %s1211_s27, %s1207_s26  ;;  %p198_p4 = scmp.eq.s32.totalorder %s840_s30, 1 }
   0xb   : > { %s1302_s11 = scalar_select %p179_p1, %s1215_s28, %s181_s9  }
   0xc   : > { %p1304_p5 = por %p192_p2, %p191_p0  ;;  %p1308_p6 = por %p198_p4, %p197_p3 }
   0xd   : > { %p843_p7 = scmp.ge.s32.totalorder %s1219_s29, 1  ;;  %p243_p8 = scmp.lt.s32.totalorder %s1219_s29, 3 }
   0xf   : > { %p244_p9 = pnand %p843_p7, %p243_p8 }
  0x10   : > { %v1075_v1 = vld [vmem:[%s1424_s1] sm:$0xff] (!%p244_p9)   ;;  %s1317_s16 = sshll.u32 (!%p244_p9), %s839_s6, 4  ;;  %v1076_v2 = vld [vmem:[%s1424_s1 + $0x8] sm:$0xff] (!%p244_p9)   ;;  %vm360_vm0 = vcmask (!%p244_p9), 261120   ;;  %v1087_v8 = vld [vmem:[%s1426_s3 + $0x10] sm:$0xff] (!%p244_p9)   ;;  %vm1222_vm1 = vmmov (!%p244_p9), 0  }
  0x11   : > { %247 = sbr.rel (%p244_p9) target bundleno = 782 (0x30e), region = 48  ;;  %p275_p10 = scmp.lt.s32.totalorder (!%p244_p9), %s1317_s16, 31  ;;  %920 = vmatprep.subr.bf16.mxu1 (!%p244_p9), %v1075_v1  ;;  %v1085_v3 = vld [vmem:[%s1426_s3] sm:$0xff] (!%p244_p9)   ;;  %v1086_v4 = vld [vmem:[%s1426_s3 + $0x8] sm:$0xff] (!%p244_p9)   ;;  %v1088_v11 = vld [vmem:[%s1426_s3 + $0x18] sm:$0xff] (!%p244_p9)  }
  0x12   : > { %921 = vmatpush3.bf16.msra.mxu1 (!%p244_p9), %v1075_v1  ;;  %v1089_v15 = vld [vmem:[%s1426_s3 + $0x20] sm:$0xff] (!%p244_p9)   ;;  %v1090_v16 = vld [vmem:[%s1426_s3 + $0x28] sm:$0xff] (!%p244_p9)   ;;  %v1091_v17 = vld [vmem:[%s1426_s3 + $0x30] sm:$0xff] (!%p244_p9)   ;;  %s272_s15 = sand.u32 (!%p244_p9), 1, %s1211_s27   ;;  %s1381_s21 = scalar_lea.hbm (!%p244_p9), %s1430_s7, %s1317_s16 }
  0x13   : > { %922 = vmatprep.subr.bf16.mxu1 (!%p244_p9), %v1076_v2  ;;  %v1092_v18 = vld [vmem:[%s1426_s3 + $0x38] sm:$0xff] (!%p244_p9)   ;;  %v846_v19 = vld [vmem:[%s1425_s2] ss:$0 sm:$0xff] (!%p244_p9)  ;;  %s273_s17 = scalar_lea.vmem (!%p244_p9), [#allocation3], %s272_s15  ;;  %s1225_s24 = smov (!%p244_p9), [#allocation3]  }
  0x14   : > { %s785_s18 = sshll.u32 (!%p244_p9), %s273_s17, 4  ;;  %s1383_s18 = int_to_ptr.vmem [resolvable:$true] %s785_s18 }
  0x15   : > { %s1157_s23 = scalar_lea.vmem (!%p244_p9), %s1383_s18, 16 }
  0x16   : > { %923 = vmatpush3.bf16.msra.mxu1 (!%p244_p9), %v1076_v2  ;;  %p1158_p11 = scmp.ne.s32.totalorder (!%p244_p9), %s1383_s18, %s1157_s23 }
  0x17   : > { %940 = vmatprep.subr.bf16.mxu1 (!%p244_p9), %v1085_v3 }
  0x18   : > { %s276_s19 = scalar_select %p275_p10, %s1317_s16, 31 }
  0x19   : > { %p1159_p12 = pnand %p1158_p11, %p1304_p5 }
  0x1a   : > { %s845_s22 = sshll.u32 %s276_s19, 2 }
  0x1b   : > { %s278_s25 = scalar_lea.vmem %s1423_s0, %s845_s22  ;;  %s773_s22 = scalar_lea.sflag [#allocation4], %s272_s15 }
  0x1c   : > { %v1077_v5 = vld [vmem:[%s278_s25] sm:$0xff]   ;;  %v1078_v6 = vld [vmem:[%s278_s25 + $0x8] sm:$0xff]   ;;  %v1079_v7 = vld [vmem:[%s278_s25 + $0x10] sm:$0xff]   ;;  %p1160_p13 = pneg %p1159_p12 }
  0x1d   : > { %924 = vmatprep.mubr.msk.bf16.mxu1 %vm360_vm0, %v1077_v5  ;;  %v1080_v9 = vld [vmem:[%s278_s25 + $0x18] sm:$0xff]   ;;  %v1081_v10 = vld [vmem:[%s278_s25 + $0x20] sm:$0xff]   ;;  %v1082_v12 = vld [vmem:[%s278_s25 + $0x28] sm:$0xff]  }
  0x1e   : > { %925 = vmatmul.mubr.msk.bf16.vlgmr.msra.gmra.mrb[0].mxu1 %vm360_vm0, %v1078_v6  ;;  %v1083_v13 = vld [vmem:[%s278_s25 + $0x30] sm:$0xff]   ;;  %v1084_v14 = vld [vmem:[%s278_s25 + $0x38] sm:$0xff]   ;;  %s1161_s25 = sshll.u32 %s1225_s24, 4  ;;  %s1162_s25 = int_to_ptr.vmem [resolvable:$false] %s1161_s25 }
  0x1f   : > { %928 = vmatprep.mubr.msk.bf16.mxu1 %vm360_vm0, %v1079_v7  ;;  %941 = vmatpush3.bf16.msra.mxu1 %v1085_v3  ;;  %s1163_s6 = scalar_lea.vmem %s1162_s25, 32  ;;  %p1164_p0 = scmp.lt.s32.totalorder %s1383_s18, %s1162_s25 }
  0x20   : > { %942 = vmatprep.subr.bf16.mxu1 %v1086_v4  ;;  %p1165_p1 = scmp.lt.s32.totalorder %s1163_s6, %s1157_s23 }
  0x22   : > { %p1166_p2 = por %p1165_p1, %p1164_p0 }
  0x23   : > { %943 = vmatpush3.bf16.msra.mxu1 %v1086_v4 }
  0x24   : > { %944 = vmatprep.subr.bf16.mxu1 %v1087_v8  ;;  %p1167_p3 = pnand %p1166_p2, %p1160_p13 }
  0x26   : > { %929 = vmatmul.mubr.msk.bf16.gmra.mrb[4].mxu1 %vm360_vm0, %v1080_v9 }
  0x27   : > { %932 = vmatprep.mubr.msk.bf16.mxu1 %vm360_vm0, %v1081_v10  ;;  %945 = vmatpush3.bf16.msra.mxu1 %v1087_v8 }
  0x28   : > { %946 = vmatprep.subr.bf16.mxu1 %v1088_v11 }
  0x2b   : > { %947 = vmatpush3.bf16.msra.mxu1 %v1088_v11 }
  0x2c   : > { %948 = vmatprep.subr.bf16.mxu1 %v1089_v15 }
  0x2e   : > { %933 = vmatmul.mubr.msk.bf16.gmra.mrb[8].mxu1 %vm360_vm0, %v1082_v12  ;;  %v1221_v12 = vmov 0.0|0.0  }
  0x2f   : > { %936 = vmatprep.mubr.msk.bf16.mxu1 %vm360_vm0, %v1083_v13  ;;  %949 = vmatpush3.bf16.msra.mxu1 %v1089_v15  ;;  %v1223_v13 = vmov 0.0   ;;  %v1224_v15 = vmov 0  }
  0x30   : > { %950 = vmatprep.subr.bf16.mxu1 %v1090_v16  ;;  %1007 = vmatprep.subr.bf16.mxu0 %v1221_v12 }
  0x31   : > { %1004 = vmatprep.mubr.msk.f32.mxu0 %vm1222_vm1, %v1223_v13  ;;  %1074 = vset.pattern.permute.xlu0 %v1224_v15 }
  0x33   : > { %951 = vmatpush3.bf16.msra.mxu1 %v1090_v16  ;;  %v865_v16 = vld [vmem:[%s1427_s4] ss:$0 sm:$0xff] }
  0x34   : > { %952 = vmatprep.subr.bf16.mxu1 %v1091_v17 }
  0x36   : > { %937 = vmatmul.mubr.msk.bf16.gmra.mrb[12].mxu1 %vm360_vm0, %v1084_v14  ;;  %v691_v14 = vld [vmem:[#allocation2] sm:$0x1] }
  0x37   : > { %953 = vmatpush3.bf16.msra.mxu1 %v1091_v17  ;;  %694 = vperm.xlu0 %1074, %v691_v14  }
  0x38   : > { %954 = vmatprep.subr.bf16.mxu1 %v1092_v18 }
  0x3b   : > { %955 = vmatpush3.bf16.msra.mxu1 %v1092_v18 }
  0xb6   : > { %v695_v14 = vpop.permute.xlu0 %694 }
  0xf1   : > { %v926_v20 = vpop.f32.mrb[0].mxu1 }
  0xf2   : > { %v428_v21 = vadd.f32 %v926_v20, %v846_v19  ;;  %v419_v22 = vpop.f32.mrb[1].mxu1 }
  0xf3   : > { %v420_v23 = vadd.f32 %v846_v19, %v419_v22  ;;  %v927_v24 = vpop.f32.mrb[2].mxu1 }
  0xf4   : > { %1093 = vtanh.f32 %v428_v21  ;;  %v431_v25 = vadd.f32 %v927_v24, %v846_v19  ;;  %v422_v26 = vpop.f32.mrb[3].mxu1 }
  0xf5   : > { %1095 = vtanh.f32 %v420_v23  ;;  %v423_v27 = vadd.f32 %v846_v19, %v422_v26 }
  0xf6   : > { %1097 = vtanh.f32 %v431_v25 }
  0xf7   : > { %1099 = vtanh.f32 %v423_v27 }
  0xf9   : > { %v930_v28 = vpop.f32.mrb[4].mxu1 }
  0xfa   : > { %v444_v29 = vadd.f32 %v930_v28, %v846_v19  ;;  %v435_v30 = vpop.f32.mrb[5].mxu1 }
  0xfb   : > { %v436_v31 = vadd.f32 %v846_v19, %v435_v30  ;;  %v931_v32 = vpop.f32.mrb[6].mxu1 }
  0xfc   : > { %1101 = vtanh.f32 %v444_v29  ;;  %v447_v33 = vadd.f32 %v931_v32, %v846_v19  ;;  %v438_v34 = vpop.f32.mrb[7].mxu1 }
  0xfd   : > { %1103 = vtanh.f32 %v436_v31  ;;  %v439_v35 = vadd.f32 %v846_v19, %v438_v34 }
  0xfe   : > { %v1094_v36 = vpop.eup %1093  ;;  %1105 = vtanh.f32 %v447_v33 }
  0xff   : > { %v1096_v37 = vpop.eup %1095  ;;  %1107 = vtanh.f32 %v439_v35 }
 0x100   : > { %v1098_v38 = vpop.eup %1097 }
 0x101   : > { %v1100_v39 = vpop.eup %1099  ;;  %v499_v40 = vpack.c.bf16 %v1098_v38, %v1094_v36  ;;  %v934_v41 = vpop.f32.mrb[8].mxu1 }
 0x102   : > { %v498_v42 = vpack.c.bf16 %v1100_v39, %v1096_v37  ;;  %v460_v43 = vadd.f32 %v934_v41, %v846_v19  ;;  %v451_v44 = vpop.f32.mrb[9].mxu1 }
 0x103   : > { %v452_v45 = vadd.f32 %v846_v19, %v451_v44  ;;  %v935_v46 = vpop.f32.mrb[10].mxu1 }
 0x104   : > { %956 = vmatprep.mubr.bf16.mxu1 %v498_v42  ;;  %1109 = vtanh.f32 %v460_v43  ;;  %v463_v47 = vadd.f32 %v935_v46, %v846_v19  ;;  %v454_v48 = vpop.f32.mrb[11].mxu1 }
 0x105   : > { %957 = vmatmul.mubr.bf16.vlgmr.msra.gmra.mrb[16].mxu1 %v499_v40  ;;  %1111 = vtanh.f32 %v452_v45  ;;  %v455_v49 = vadd.f32 %v846_v19, %v454_v48 }
 0x106   : > { %v1102_v50 = vpop.eup %1101  ;;  %1113 = vtanh.f32 %v463_v47 }
 0x107   : > { %v1104_v51 = vpop.eup %1103  ;;  %1115 = vtanh.f32 %v455_v49 }
 0x108   : > { %v1106_v52 = vpop.eup %1105 }
 0x109   : > { %v1108_v53 = vpop.eup %1107  ;;  %v501_v54 = vpack.c.bf16 %v1106_v52, %v1102_v50  ;;  %v938_v55 = vpop.f32.mrb[12].mxu1 }
 0x10a   : > { %v500_v56 = vpack.c.bf16 %v1108_v53, %v1104_v51  ;;  %v476_v57 = vadd.f32 %v938_v55, %v846_v19  ;;  %v467_v58 = vpop.f32.mrb[13].mxu1 }
 0x10b   : > { %v468_v59 = vadd.f32 %v846_v19, %v467_v58  ;;  %v939_v60 = vpop.f32.mrb[14].mxu1 }
 0x10c   : > { %960 = vmatprep.mubr.bf16.mxu1 %v500_v56  ;;  %1117 = vtanh.f32 %v476_v57  ;;  %v479_v61 = vadd.f32 %v939_v60, %v846_v19  ;;  %v470_v62 = vpop.f32.mrb[15].mxu1 }
 0x10d   : > { %961 = vmatmul.mubr.bf16.gmra.mrb[20].mxu1 %v501_v54  ;;  %1119 = vtanh.f32 %v468_v59  ;;  %v471_v63 = vadd.f32 %v846_v19, %v470_v62 }
 0x10e   : > { %v1110_v0 = vpop.eup %1109  ;;  %1121 = vtanh.f32 %v479_v61 }
 0x10f   : > { %v1112_v1 = vpop.eup %1111  ;;  %1123 = vtanh.f32 %v471_v63 }
 0x110   : > { %v1114_v2 = vpop.eup %1113 }
 0x111   : > { %v1116_v3 = vpop.eup %1115  ;;  %v503_v4 = vpack.c.bf16 %v1114_v2, %v1110_v0 }
 0x112   : > { %v502_v5 = vpack.c.bf16 %v1116_v3, %v1112_v1 }
 0x114   : > { %964 = vmatprep.mubr.bf16.mxu1 %v502_v5 }
 0x115   : > { %965 = vmatmul.mubr.bf16.gmra.mrb[24].mxu1 %v503_v4 }
 0x116   : > { %v1118_v6 = vpop.eup %1117 }
 0x117   : > { %v1120_v7 = vpop.eup %1119 }
 0x118   : > { %v1122_v8 = vpop.eup %1121 }
 0x119   : > { %v1124_v9 = vpop.eup %1123  ;;  %v505_v10 = vpack.c.bf16 %v1122_v8, %v1118_v6 }
 0x11a   : > { %v504_v11 = vpack.c.bf16 %v1124_v9, %v1120_v7  ;;  %v690_v9 = vld [vmem:[%s1428_s5] sm:$0x1] }
 0x11c   : > { %968 = vmatprep.mubr.bf16.mxu1 %v504_v11 }
 0x11d   : > { %969 = vmatmul.mubr.bf16.gmra.mrb[28].mxu1 %v505_v10  ;;  %v697_v10 = vlaneseq }
 0x11f   : > { %v698_v11 = vshrl.u32 %v697_v10, 7 }
 0x121   : > { %v699_v13 = vsub.s32 0, %v698_v11 }
 0x123   : > { %v700_v15 = vrot.slane %v695_v14, %v699_v13 }
 0x1d8   : > { %v958_v17 = vpop.f32.mrb[16].mxu1 }
 0x1d9   : > { %v620_v18 = vadd.f32 %v958_v17, %v865_v16  ;;  %v611_v19 = vpop.f32.mrb[17].mxu1 }
 0x1da   : > { %v612_v20 = vadd.f32 %v865_v16, %v611_v19  ;;  %v959_v21 = vpop.f32.mrb[18].mxu1 }
 0x1db   : > { %1125 = vtanh.f32 %v620_v18  ;;  %v623_v22 = vadd.f32 %v959_v21, %v865_v16  ;;  %v614_v23 = vpop.f32.mrb[19].mxu1 }
 0x1dc   : > { %1127 = vtanh.f32 %v612_v20  ;;  %v615_v24 = vadd.f32 %v865_v16, %v614_v23 }
 0x1dd   : > { %1129 = vtanh.f32 %v623_v22 }
 0x1de   : > { %1131 = vtanh.f32 %v615_v24 }
 0x1e0   : > { %v962_v25 = vpop.f32.mrb[20].mxu1 }
 0x1e1   : > { %v636_v26 = vadd.f32 %v962_v25, %v865_v16  ;;  %v627_v27 = vpop.f32.mrb[21].mxu1 }
 0x1e2   : > { %v628_v28 = vadd.f32 %v865_v16, %v627_v27  ;;  %v963_v29 = vpop.f32.mrb[22].mxu1 }
 0x1e3   : > { %1133 = vtanh.f32 %v636_v26  ;;  %v639_v30 = vadd.f32 %v963_v29, %v865_v16  ;;  %v630_v31 = vpop.f32.mrb[23].mxu1 }
 0x1e4   : > { %1135 = vtanh.f32 %v628_v28  ;;  %v631_v32 = vadd.f32 %v865_v16, %v630_v31 }
 0x1e5   : > { %v1126_v33 = vpop.eup %1125  ;;  %1137 = vtanh.f32 %v639_v30 }
 0x1e6   : > { %v1128_v34 = vpop.eup %1127  ;;  %1139 = vtanh.f32 %v631_v32 }
 0x1e7   : > { %v1130_v35 = vpop.eup %1129 }
 0x1e8   : > { %v1132_v36 = vpop.eup %1131  ;;  %v966_v37 = vpop.f32.mrb[24].mxu1  ;;  %v1011_v38 = vpack.c.bf16 %v1130_v35, %v1126_v33 }
 0x1e9   : > { %v1008_v39 = vpack.c.bf16 %v1132_v36, %v1128_v34  ;;  %v652_v40 = vadd.f32 %v966_v37, %v865_v16  ;;  %v643_v41 = vpop.f32.mrb[25].mxu1 }
 0x1ea   : > { %v644_v42 = vadd.f32 %v865_v16, %v643_v41  ;;  %v967_v43 = vpop.f32.mrb[26].mxu1 }
 0x1eb   : > { %1009 = vmatpush3.bf16.xpose.msra.mxu0 %v1008_v39  ;;  %1141 = vtanh.f32 %v652_v40  ;;  %v655_v44 = vadd.f32 %v967_v43, %v865_v16  ;;  %v646_v45 = vpop.f32.mrb[27].mxu1 }
 0x1ec   : > { %1143 = vtanh.f32 %v644_v42  ;;  %1010 = vmatprep.subr.bf16.mxu0 %v1221_v12  ;;  %v647_v46 = vadd.f32 %v865_v16, %v646_v45 }
 0x1ed   : > { %v1134_v47 = vpop.eup %1133  ;;  %1145 = vtanh.f32 %v655_v44 }
 0x1ee   : > { %v1136_v48 = vpop.eup %1135  ;;  %1147 = vtanh.f32 %v647_v46 }
 0x1ef   : > { %v1138_v49 = vpop.eup %1137 }
 0x1f0   : > { %v1140_v50 = vpop.eup %1139  ;;  %v970_v51 = vpop.f32.mrb[28].mxu1  ;;  %v1017_v52 = vpack.c.bf16 %v1138_v49, %v1134_v47 }
 0x1f1   : > { %v1014_v53 = vpack.c.bf16 %v1140_v50, %v1136_v48  ;;  %v668_v54 = vadd.f32 %v970_v51, %v865_v16  ;;  %v659_v55 = vpop.f32.mrb[29].mxu1 }
 0x1f2   : > { %v660_v56 = vadd.f32 %v865_v16, %v659_v55  ;;  %v971_v57 = vpop.f32.mrb[30].mxu1 }
 0x1f3   : > { %1012 = vmatpush3.bf16.xpose.msra.mxu0 %v1011_v38  ;;  %1149 = vtanh.f32 %v668_v54  ;;  %v671_v58 = vadd.f32 %v971_v57, %v865_v16  ;;  %v662_v59 = vpop.f32.mrb[31].mxu1 }
 0x1f4   : > { %1013 = vmatprep.subr.bf16.mxu0 %v1221_v12  ;;  %1151 = vtanh.f32 %v660_v56  ;;  %v663_v60 = vadd.f32 %v865_v16, %v662_v59 }
 0x1f5   : > { %v1142_v61 = vpop.eup %1141  ;;  %1153 = vtanh.f32 %v671_v58 }
 0x1f6   : > { %v1144_v62 = vpop.eup %1143  ;;  %1155 = vtanh.f32 %v663_v60 }
 0x1f7   : > { %v1146_v63 = vpop.eup %1145 }
 0x1f8   : > { %v1148_v0 = vpop.eup %1147  ;;  %v1023_v1 = vpack.c.bf16 %v1146_v63, %v1142_v61 }
 0x1f9   : > { %v1020_v2 = vpack.c.bf16 %v1148_v0, %v1144_v62 }
 0x1fb   : > { %1015 = vmatpush3.bf16.xpose.msra.mxu0 %v1014_v53 }
 0x1fc   : > { %1016 = vmatprep.subr.bf16.mxu0 %v1221_v12 }
 0x1fd   : > { %v1150_v3 = vpop.eup %1149 }
 0x1fe   : > { %v1152_v4 = vpop.eup %1151 }
 0x1ff   : > { %v1154_v5 = vpop.eup %1153 }
 0x200   : > { %v1156_v6 = vpop.eup %1155  ;;  %v1029_v7 = vpack.c.bf16 %v1154_v5, %v1150_v3 }
 0x201   : > { %v1026_v8 = vpack.c.bf16 %v1156_v6, %v1152_v4 }
 0x203   : > { %1018 = vmatpush3.bf16.xpose.msra.mxu0 %v1017_v52 }
 0x204   : > { %1019 = vmatprep.subr.bf16.mxu0 %v1221_v12 }
 0x20b   : > { %1021 = vmatpush3.bf16.xpose.msra.mxu0 %v1020_v2 }
 0x20c   : > { %1022 = vmatprep.subr.bf16.mxu0 %v1221_v12 }
 0x213   : > { %1024 = vmatpush3.bf16.xpose.msra.mxu0 %v1023_v1 }
 0x214   : > { %1025 = vmatprep.subr.bf16.mxu0 %v1221_v12 }
 0x21b   : > { %1027 = vmatpush3.bf16.xpose.msra.mxu0 %v1026_v8 }
 0x21c   : > { %1028 = vmatprep.subr.bf16.mxu0 %v1221_v12 }
 0x223   : > { %1030 = vmatpush3.bf16.xpose.msra.mxu0 %v1029_v7 }
 0x22a   : > { %1005 = vmatmul.mubr.f32.vlgmr.msra.gmra.mrb[0].mxu0 %v690_v9 }
 0x2fd   : > { %v767_v16 = vpop.f32.mrb[0].mxu0 }
 0x2fe   : > { %v768_v17 = vadd.f32 %v767_v16, %v700_v15  ;;  %v1006_v18 = vpop.f32.mrb[1].mxu0 }
 0x300   : > { %771 = vst [vmem:[%s273_s17] sm:$0x1] %v768_v17 }
 0x301   : > { %1170 = shalt.err (!%p1167_p3)
}
 0x302   : > { %s1171_s16 = scalar_lea.hbm %s1381_s21, 16  ;;  %s1175_s10 = scalar_lea.hbm %s1430_s7, 32 }
 0x303   : > { %p1172_p4 = scmp.ne.s32.totalorder %s1381_s21, %s1171_s16  ;;  %p1176_p9 = scmp.lt.u32.totalorder %s1381_s21, %s1430_s7 }
 0x304   : > { %p1177_p10 = scmp.lt.u32.totalorder %s1175_s10, %s1171_s16  ;;  %p1179_p12 = scmp.lt.u32.totalorder %s1171_s16, %s1381_s21 }
 0x305   : > { %p1173_p7 = pnand %p1172_p4, %p1304_p5 }
 0x306   : > { %p1178_p11 = por %p1177_p10, %p1176_p9 }
 0x307   : > { %p1174_p8 = pneg %p1173_p7 }
 0x308   : > { %p1180_p13 = por %p1179_p12, %p1178_p11 }
 0x30a   : > { %p1181_p0 = pnand %p1180_p13, %p1174_p8 }
 0x30c   : > { %1184 = shalt.err (!%p1181_p0)
}
 0x30d   : > { %1031 = dma.vmem_to_hbm [thread:$0]  (%p1304_p5), %s1383_s18, 16, %s1381_s21, %s773_s22  }
 0x30e PF: > { %p1037_p1 = scmp.ge.s32.totalorder %s1219_s29, 2  ;;  %s797_s17 = sand.u32 1, %s1207_s26  }
 0x30f   : > { %s798_s19 = scalar_lea.sflag [#allocation4], %s797_s17 }
 0x310   : > { %p1034_p2 = pnand %p1037_p1, %p1308_p6 }
 0x312   : > { %1202 = dma.done.wait (!%p1034_p2), %s798_s19, 16  }
 0x313   : > { %1204 = vsyncadd (!%p1034_p2), %s798_s19, 4294967280  ;;  %p19_p3 = scmp.ge.s32.totalorder %s1292_s8, 4   ;;  %s1433_s26 = smov %s1211_s27 }
 0x314   : > { %s1434_s27 = smov %s1215_s28  ;;  %s1435_s28 = smov %s1302_s11 }
 0x315   : > { %s1436_s29 = smov %s1292_s8  ;;  %21 = sbr.rel (!%p19_p3) target bundleno = 6 (0x6), region = 83 }
 0x31c   :  { %802 = vsyncpa [#allocation4], 1 }
 0x31d   :  { %804 = vsyncpa [#allocation4 + $0x1], 1 }

</bundles_post_ra>
